<compile_context>
chip_gen: v6e
topology: v6e:2x2x1
jax: 0.10.0
libtpu: 0.0.40
codegen_flags: <defaults>
</compile_context>

<pallas_src>
import jax
import jax.numpy as jnp
from jax.experimental import pallas as pl
from jax.experimental.pallas import tpu as pltpu

_LANES = 1024  # preferred lane-dense slab width (8 vregs wide, unmasked vst)


def _neg_scale_kernel(neg_coeff_ref, g_ref, o_ref):
    # out = g * (-coeff). Scalar already arrives negated in SMEM, so the body is
    # a single VPU multiply -- entirely hidden under the DMA (mem-bound kernel).
    o_ref[...] = g_ref[...] * neg_coeff_ref[0].astype(o_ref.dtype)


def _tpu_block_config(lanes: int, itemsize: int):
    """Per-generation tile sizing. Returns (block_rows, vmem_limit_bytes, min_grid_steps)."""
    kind = ""
    try:
        kind = jax.devices()[0].device_kind.lower()
    except Exception:
        pass
    if "v7" in kind:
        # v7x: 64 MiB VMEM/TC, ~3.2 TB/s HBM -> big blocks, raise scoped limit,
        # and require >=2 grid steps so both TensorCores get work.
        target_bytes, vmem_limit, min_steps = 8 << 20, 48 << 20, 2
    elif "v6" in kind:
        # v6e: 128 MiB VMEM, ~1.4 TB/s HBM -> 4 MiB blocks, plenty of headroom.
        target_bytes, vmem_limit, min_steps = 4 << 20, 64 << 20, 1
    else:
        # v5e / unknown: default 16 MiB scoped VMEM limit -> keep 2 MiB blocks
        # (4 pipeline buffers = 8 MiB) and leave the limit alone.
        target_bytes, vmem_limit, min_steps = 2 << 20, None, 1
    block_rows = max(8, (target_bytes // (lanes * itemsize)) // 8 * 8)
    return block_rows, vmem_limit, min_steps


def _neg_scale(g: jax.Array, coeff) -> jax.Array:
    """Compute -coeff * g, preserving shape/dtype, at 2N-bytes HBM traffic."""
    orig_shape = g.shape
    dtype = g.dtype
    n = g.size
    neg_coeff = jnp.negative(jnp.asarray(coeff, dtype=jnp.float32)).reshape((1,))

    if n == 0:
        return g

    # Pick the widest lane-dense layout that needs NO padding. A contiguous
    # reshape is free; jnp.pad + post-slice would each add a full HBM pass.
    if n % _LANES == 0:
        lanes = _LANES
    elif n % 128 == 0:
        lanes = 128
    else:
        # Ragged size (rare for NN gradients): a standalone kernel would force a
        # full-array pad + slice (~3x HBM traffic), so let XLA fuse the trivial
        # multiply into the surrounding backward graph instead.
        return (g * neg_coeff[0]).astype(dtype)

    rows = n // lanes
    g2d = g.reshape(rows, lanes)  # free: reshape of a contiguous array

    block_rows, vmem_limit, min_steps = _tpu_block_config(lanes, dtype.itemsize)
    block_rows = min(block_rows, rows)
    if min_steps > 1 and rows > min_steps * 8:
        # Ensure the ("parallel",) axis has work for every TensorCore (v7x).
        per_step = ((pl.cdiv(rows, min_steps) + 7) // 8) * 8  # sublane-aligned
        block_rows = min(block_rows, per_step)
    grid = (pl.cdiv(rows, block_rows),)

    out2d = pl.pallas_call(
        _neg_scale_kernel,
        out_shape=jax.ShapeDtypeStruct((rows, lanes), dtype),
        grid=grid,
        in_specs=[
            pl.BlockSpec(memory_space=pltpu.MemorySpace.SMEM),    # -coeff scalar
            pl.BlockSpec((block_rows, lanes), lambda i: (i, 0)),  # grad tile
        ],
        out_specs=pl.BlockSpec((block_rows, lanes), lambda i: (i, 0)),
        # Donate the incoming cotangent buffer: in the backward graph it has no
        # other consumer, so the scale happens in place (no defensive copy).
        input_output_aliases={1: 0},
        compiler_params=pltpu.CompilerParams(
            dimension_semantics=("parallel",),
            vmem_limit_bytes=vmem_limit,
        ),
        cost_estimate=pl.CostEstimate(
            flops=n, transcendentals=0, bytes_accessed=2 * n * dtype.itemsize
        ),
    )(neg_coeff, g2d)

    return out2d.reshape(orig_shape)


@jax.custom_vjp
def gradient_reverse(x: jax.Array, coeff=1.0) -> jax.Array:
    # Forward semantics of GradientReverseFunction.forward: output = input * 1.0
    # Pure identity -> no kernel, no HBM traffic.
    return x


def _grl_fwd(x, coeff):
    return x, coeff


def _grl_bwd(coeff, g):
    # Backward semantics: grad_input = -coeff * grad_output; no grad for coeff
    # (matches PyTorch's `return grad_output.neg() * ctx.coeff, None`).
    # TODO(synk): coeff cotangent is symbolically zero; use nondiff handling if
    # a traced coeff ever needs a gradient.
    return (_neg_scale(g, coeff), None)


gradient_reverse.defvjp(_grl_fwd, _grl_bwd)


class GradientReverseLayer:
    """JAX/Pallas equivalent of the PyTorch GradientReverseLayer module."""

    def __call__(self, x, coeff=1.0):
        return gradient_reverse(x, coeff)


if __name__ == "__main__":
    key = jax.random.PRNGKey(0)
    # NCHW: batch=2, channels=4, spatial=16x16  (2048 elements -> 1024-lane path)
    x = jax.random.normal(key, (2, 4, 16, 16), dtype=jnp.float32)

    layer = GradientReverseLayer()
    y = layer(x, 1.0)
    y = jax.block_until_ready(y)
    assert y.shape == x.shape and y.dtype == x.dtype
    assert jnp.allclose(y, x), "forward must be identity"

    # Backward path exercises the Pallas kernel (1024-lane slab).
    coeff = 0.5
    grads = jax.grad(lambda inp: jnp.sum(gradient_reverse(inp, coeff)))(x)
    grads = jax.block_until_ready(grads)
    assert grads.shape == x.shape and grads.dtype == x.dtype
    assert jnp.allclose(grads, -coeff * jnp.ones_like(x)), "backward must be -coeff * grad"

    # 128-aligned (but not 1024-aligned) size -> 128-lane Pallas path.
    x2 = jax.random.normal(jax.random.PRNGKey(1), (3, 128), dtype=jnp.float32)
    g2 = jax.grad(lambda inp: jnp.sum(gradient_reverse(inp, 2.0)))(x2)
    g2 = jax.block_until_ready(g2)
    assert jnp.allclose(g2, -2.0 * jnp.ones_like(x2))

    # Ragged size -> fused jnp fallback (no pad/slice round-trips).
    x3 = jax.random.normal(jax.random.PRNGKey(2), (5, 7), dtype=jnp.float32)
    g3 = jax.grad(lambda inp: jnp.sum(gradient_reverse(inp, 1.5)))(x3)
    g3 = jax.block_until_ready(g3)
    assert jnp.allclose(g3, -1.5 * jnp.ones_like(x3))

    print("KERNEL_OK")
</pallas_src>

<mosaic_0001>
module attributes {stable_mosaic.version = 11 : i64} {
  func.func @_neg_scale_kernel(%arg0: i32, %arg1: memref<1xf32, #tpu.memory_space<smem>>, %arg2: memref<2x1024xf32, #tpu.memory_space<vmem>>, %arg3: memref<2x1024xf32, #tpu.memory_space<vmem>>) attributes {dimension_semantics = [#tpu.dimension_semantics<parallel>], iteration_bounds = array<i64: 1>, scalar_prefetch = 0 : i64, scratch_operands = 0 : i64, tpu.core_type = #tpu.core_type<tc>, window_params = [{transform_indices = @transform_0, window_bounds = array<i64: 1>}, {transform_indices = @transform_1, window_bounds = array<i64: 2, 1024>}, {transform_indices = @transform_2, window_bounds = array<i64: 2, 1024>}]} {
    %c0 = arith.constant 0 : index
    %c0_0 = arith.constant 0 : index
    %0 = vector.load %arg2[%c0, %c0_0] : memref<2x1024xf32, #tpu.memory_space<vmem>>, vector<2x1024xf32>
    %c0_1 = arith.constant 0 : index
    %1 = memref.load %arg1[%c0_1] : memref<1xf32, #tpu.memory_space<smem>>
    %2 = vector.broadcast %1 : f32 to vector<2x1024xf32>
    %3 = arith.mulf %0, %2 : vector<2x1024xf32>
    %c0_2 = arith.constant 0 : index
    %c0_3 = arith.constant 0 : index
    %4 = vector.load %arg3[%c0_2, %c0_3] : memref<2x1024xf32, #tpu.memory_space<vmem>>, vector<2x1024xf32>
    tpu.vector_store %arg3[%c0_2, %c0_3], %3 {strides = array<i32>} : memref<2x1024xf32, #tpu.memory_space<vmem>>, vector<2x1024xf32>,
    return
  }
  func.func @transform_0(%arg0: i32) -> i32 {
    %c0_i32 = arith.constant 0 : i32
    %c0_i32_0 = arith.constant 0 : i32
    return %c0_i32 : i32
  }
  func.func @transform_1(%arg0: i32) -> (i32, i32) {
    %c0_i32 = arith.constant 0 : i32
    %c0_i32_0 = arith.constant 0 : i32
    return %arg0, %c0_i32 : i32, i32
  }
  func.func @transform_2(%arg0: i32) -> (i32, i32) {
    %c0_i32 = arith.constant 0 : i32
    %c0_i32_0 = arith.constant 0 : i32
    return %arg0, %c0_i32 : i32, i32
  }
}

</mosaic_0001>

<bundles_post_ra>
// kernel: tpu_custom_call.1
= control target key start
LH: loop header
LB: loop body
LE: loop exit
PB: predicated region body
PF: predicated region fallthrough
CT: control target
= control target key end

     0   :  { %8 = vsyncpa [#allocation4], 0  ;;  %s120_s0 = inlined_call_operand.<no memory space> [shape: f32[1], index: 0, kind: input, shape index: {}]   ;;  %s121_s1 = inlined_call_operand.hbm [shape: f32[2,1024], index: 1, kind: input, shape index: {}, may-alias: {1,2}]   ;;  %s122_s2 = inlined_call_operand.hbm [shape: f32[2,1024], index: 2, kind: output, shape index: {}, may-alias: {1,2}]  }
   0x1   :  { %9 = vsyncpa [#allocation5], 0  ;;  %s94_s9 = smov [#allocation3]  }
   0x2   :  { %s18_s10 = sshll.u32 %s94_s9, 4  ;;  %s19_s10 = int_to_ptr.vmem [resolvable:$true] %s18_s10 }
   0x3   :  { %s58_s11 = scalar_lea.vmem %s19_s10, 256  ;;  %p63_p1 = scmp.lt.s32.totalorder %s19_s10, %s19_s10 }
   0x4   :  { %p59_p0 = scmp.ne.s32.totalorder %s19_s10, %s58_s11  ;;  %p64_p2 = scmp.lt.s32.totalorder %s58_s11, %s58_s11 }
   0x6   :  { %p65_p3 = por %p64_p2, %p63_p1 }
   0x8   :  { %p66_p4 = pnand %p65_p3, %p59_p0 }
   0xa   :  { %69 = shalt.err (!%p66_p4)
}
   0xb   :  { %21 = dma.hbm_to_vmem [thread:$0]  %s121_s1, 256, %s19_s10, [#allocation4]  }
   0xc   :  { %90 = dma.done.wait [#allocation4], 256  }
   0xd   :  { %91 = vsyncadd [#allocation4], 4294967040  ;;  %v28_v0 = vstv %s120_s0  ;;  %s95_s16 = smov [#allocation6]   ;;  %v25_v1 = vld [vmem:[#allocation3] sm:$0xff]  ;;  %v26_v2 = vld [vmem:[#allocation3 + $0x8] sm:$0xff] }
   0xe   :  { %s39_s17 = sshll.u32 %s95_s16, 4  ;;  %v29_v3 = vmul.f32 %v28_v0, %v25_v1  ;;  %v30_v4 = vmul.f32 %v28_v0, %v26_v2  ;;  %s40_s17 = int_to_ptr.vmem [resolvable:$true] %s39_s17 }
   0xf   :  { %s70_s18 = scalar_lea.vmem %s40_s17, 256  ;;  %p75_p6 = scmp.lt.s32.totalorder %s40_s17, %s40_s17 }
  0x10   :  { %31 = vst [vmem:[#allocation6] sm:$0xff] %v29_v3  ;;  %32 = vst [vmem:[#allocation6 + $0x8] sm:$0xff] %v30_v4  ;;  %p71_p5 = scmp.ne.s32.totalorder %s40_s17, %s70_s18  ;;  %p76_p7 = scmp.lt.s32.totalorder %s70_s18, %s70_s18 }
  0x12   :  { %p77_p8 = por %p76_p7, %p75_p6 }
  0x14   :  { %p78_p9 = pnand %p77_p8, %p71_p5 }
  0x16   :  { %81 = shalt.err (!%p78_p9)
}
  0x17   :  { %42 = dma.vmem_to_hbm [thread:$0]  %s40_s17, 256, %s122_s2, [#allocation5]  }
  0x18   :  { %92 = dma.done.wait [#allocation5], 256  }
  0x19   :  { %93 = vsyncadd [#allocation5], 4294967040 }
  0x1a   :  { %46 = vsyncpa [#allocation4], 1 }
  0x1b   :  { %47 = vsyncpa [#allocation5], 1 }

</bundles_post_ra>
